<compile_context>
chip_gen: v7x
topology: tpu7x:2x2x1
jax: 0.10.0
libtpu: 0.0.40
codegen_flags: <defaults>
</compile_context>

<pallas_src>
import jax
import jax.numpy as jnp
from jax.experimental import pallas as pl
from jax.experimental.pallas import tpu as pltpu

BN_EPS = 1e-5
LANES = 128
VMEM_LIMIT = 32 * 1024 * 1024       # safe scoped-VMEM limit on v5e/v6e/v7x
VMEM_BUDGET = 24 * 1024 * 1024      # headroom target for the double-buffered pipeline


def _round_up(x, m):
    return (x + m - 1) // m * m


# ----------------- Pass 1: conv (im2col matmul) + PReLU + partial BN stats ----

def _conv_prelu_stats_kernel(alpha_ref, patches_ref, w_ref, y_ref, stats_ref):
    # MXU: (TM, Kp) bf16 x (Kp, TN) bf16 -> f32 accumulator.
    y = jnp.dot(patches_ref[...], w_ref[...], preferred_element_type=jnp.float32)
    # PReLU with a single shared slope (PyTorch nn.PReLU default num_parameters=1).
    alpha = alpha_ref[0]
    y = jnp.where(y > 0, y, alpha * y)
    # Per-tile partial BN statistics in f32 (computed before the bf16 downcast).
    # Zero rows from the Mp padding contribute exactly 0 to both sums.
    stats_ref[0, 0:1, :] = jnp.sum(y, axis=0, keepdims=True)
    stats_ref[0, 1:2, :] = jnp.sum(y * y, axis=0, keepdims=True)
    # bf16 intermediate halves the write+read traffic across the two mem-bound passes.
    y_ref[...] = y.astype(y_ref.dtype)


# ----------------- Pass 2: apply the batch-norm affine ------------------------

def _bn_apply_kernel(y_ref, scale_ref, shift_ref, out_ref):
    out_ref[...] = y_ref[...].astype(jnp.float32) * scale_ref[...] + shift_ref[...]


# ----------------- Forward (NHWC-internal pipeline) ---------------------------

@jax.jit
def conv_block_forward_nhwc(x_nhwc, weight_oihw, alpha, gamma, beta):
    N, H, W, Cin = x_nhwc.shape
    Cout = weight_oihw.shape[0]
    Hout = (H + 2 - 3) // 2 + 1
    Wout = (W + 2 - 3) // 2 + 1
    M = N * Hout * Wout
    K = 9 * Cin

    Kp = _round_up(K, 16)                 # bf16 sublane alignment for patches/weight
    Cp = _round_up(Cout, LANES)           # lane-dense output stores

    # Cout tiling: keep the full Cp as one block up to 256 lanes; tile wider layers so
    # the resident weight + tiles stay comfortable inside v7x's 64 MiB VMEM.
    if Cp <= 256:
        TN = Cp
    else:
        TN = 256 if Cp % 256 == 0 else 128
    grid_n = Cp // TN

    # Row tile: big enough to amortize the ~0.35 us/grid-step overhead, small enough
    # that the double-buffered working set fits the VMEM budget, and small enough that
    # grid_m >= 2 so both v7x TensorCores get work even on small-M shapes.
    TM = 512
    while TM > 64 and (2 * TM * Kp * 2 + 2 * Kp * TN * 2 + 2 * TM * TN * 2) > VMEM_BUDGET:
        TM //= 2
    TM = min(TM, max(16, _round_up(-(-M // 2), 16)))
    Mp = _round_up(M, TM)
    grid_m = Mp // TM

    # im2col built directly in bf16 (K ordered (kh, kw, cin)) under the same jit, so
    # XLA never materializes an f32 slab.
    xp = jnp.pad(x_nhwc.astype(jnp.bfloat16), ((0, 0), (1, 1), (1, 1), (0, 0)))
    taps = [xp[:, kh:kh + 2 * Hout:2, kw:kw + 2 * Wout:2, :]
            for kh in range(3) for kw in range(3)]
    patches = jnp.concatenate(taps, axis=-1).reshape(M, K)
    patches = jnp.pad(patches, ((0, Mp - M), (0, Kp - K)))

    # (Cout, Cin, 3, 3) -> (kh, kw, cin, cout) -> (K, Cout), padded, bf16.
    w_mat = jnp.transpose(weight_oihw, (2, 3, 1, 0)).reshape(K, Cout)
    w_mat = jnp.pad(w_mat, ((0, Kp - K), (0, Cp - Cout))).astype(jnp.bfloat16)

    alpha_arr = jnp.asarray(alpha, jnp.float32).reshape(1)

    y_flat, stats = pl.pallas_call(
        _conv_prelu_stats_kernel,
        grid=(grid_m, grid_n),
        in_specs=[
            pl.BlockSpec(memory_space=pltpu.MemorySpace.SMEM),   # PReLU slope
            pl.BlockSpec((TM, Kp), lambda i, j: (i, 0)),         # patches row tile
            pl.BlockSpec((Kp, TN), lambda i, j: (0, j)),         # weight column tile
        ],
        out_specs=(
            pl.BlockSpec((TM, TN), lambda i, j: (i, j)),         # bf16 conv+PReLU tile
            pl.BlockSpec((1, 2, TN), lambda i, j: (i, 0, j)),    # per-tile (sum, sumsq)
        ),
        out_shape=(
            jax.ShapeDtypeStruct((Mp, Cp), jnp.bfloat16),
            jax.ShapeDtypeStruct((grid_m, 2, Cp), jnp.float32),
        ),
        compiler_params=pltpu.CompilerParams(
            dimension_semantics=("parallel", "parallel"),
            vmem_limit_bytes=VMEM_LIMIT),
        cost_estimate=pl.CostEstimate(
            flops=2 * Mp * Kp * Cp,
            transcendentals=0,
            bytes_accessed=Mp * Kp * 2 + grid_m * Kp * Cp * 2
            + Mp * Cp * 2 + grid_m * 2 * Cp * 4),
    )(alpha_arr, patches, w_mat)

    # Fold per-tile partials into per-channel BN affine (O(Cp) glue work in XLA).
    # TODO(synk): E[x^2]-E[x]^2 in f32 can cancel for very large M / large-mean
    # activations; switch to Chan's parallel combine if that regime matters.
    total = jnp.sum(stats, axis=0)                        # (2, Cp)
    mean = total[0] / M
    var = jnp.maximum(total[1] / M - mean * mean, 0.0)    # biased var (train-mode BN)
    inv = jax.lax.rsqrt(var + BN_EPS)
    gamma_p = jnp.pad(jnp.asarray(gamma, jnp.float32).reshape(Cout), (0, Cp - Cout))
    beta_p = jnp.pad(jnp.asarray(beta, jnp.float32).reshape(Cout), (0, Cp - Cout))
    scale = (gamma_p * inv).reshape(1, Cp)
    shift = (beta_p - mean * gamma_p * inv).reshape(1, Cp)

    # Pass 2 is pure streaming: use fewer, larger row tiles (must divide Mp, fit the
    # VMEM budget, and keep >= 2 grid steps when possible so both v7x cores stream).
    if Cp <= 512:
        TN2 = Cp
    elif Cp % 512 == 0:
        TN2 = 512
    else:
        TN2 = 256 if Cp % 256 == 0 else 128
    grid_n2 = Cp // TN2
    cand = [k for k in range(1, grid_m + 1)
            if grid_m % k == 0 and TM * k <= 4096
            and TM * k * TN2 * 12 <= VMEM_BUDGET]
    pref = [k for k in cand if grid_m // k >= 2]
    k2 = max(pref) if pref else max(cand)
    TM2 = TM * k2
    grid_m2 = Mp // TM2

    out_flat = pl.pallas_call(
        _bn_apply_kernel,
        grid=(grid_m2, grid_n2),
        in_specs=[
            pl.BlockSpec((TM2, TN2), lambda i, j: (i, j)),       # bf16 activations
            pl.BlockSpec((1, TN2), lambda i, j: (0, j)),         # scale (resident/col)
            pl.BlockSpec((1, TN2), lambda i, j: (0, j)),         # shift (resident/col)
        ],
        out_specs=pl.BlockSpec((TM2, TN2), lambda i, j: (i, j)),
        out_shape=jax.ShapeDtypeStruct((Mp, Cp), jnp.float32),
        compiler_params=pltpu.CompilerParams(
            dimension_semantics=("parallel", "parallel"),
            vmem_limit_bytes=VMEM_LIMIT),
        cost_estimate=pl.CostEstimate(
            flops=2 * Mp * Cp,
            transcendentals=0,
            bytes_accessed=Mp * Cp * 2 + Mp * Cp * 4 + 2 * Cp * 4),
    )(y_flat, scale, shift)

    # Slice + reshape stay fused with the caller's transpose (layout plumbing only).
    return out_flat[:M, :Cout].reshape(N, Hout, Wout, Cout)


@jax.jit
def conv_block_forward(x_nchw, weight_oihw, alpha, gamma, beta):
    """ConvBlock.forward: bn1(act1(conv1(x))).  NCHW in / NCHW out (PyTorch API).
    Use conv_block_forward_nhwc directly to avoid the layout transposes."""
    x_nhwc = jnp.transpose(x_nchw, (0, 2, 3, 1))
    y_nhwc = conv_block_forward_nhwc(x_nhwc, weight_oihw, alpha, gamma, beta)
    return jnp.transpose(y_nhwc, (0, 3, 1, 2))


def init_params(key, in_channels, out_channels):
    """Deterministic param init matching the PyTorch module's init_weight()."""
    fan_in = in_channels * 9
    fan_out = out_channels * 9
    bound = (6.0 / (fan_in + fan_out)) ** 0.5        # xavier_uniform_
    weight = jax.random.uniform(
        key, (out_channels, in_channels, 3, 3), jnp.float32, -bound, bound)
    alpha = jnp.float32(0.25)                        # PReLU default init
    gamma = jnp.ones((out_channels,), jnp.float32)   # bn weight = 1
    beta = jnp.zeros((out_channels,), jnp.float32)   # bn bias = 0
    return weight, alpha, gamma, beta


if __name__ == "__main__":
    key = jax.random.PRNGKey(0)
    kx, kw = jax.random.split(key)

    N, Cin, Cout, H, W = 2, 4, 8, 16, 16
    x = jax.random.normal(kx, (N, Cin, H, W), jnp.float32)
    weight, alpha, gamma, beta = init_params(kw, Cin, Cout)

    out = conv_block_forward(x, weight, alpha, gamma, beta)
    out = jax.block_until_ready(out)

    # Reference: same math in plain JAX — conv on the same bf16 operands the kernel
    # consumes (f32 accumulation), then f32 PReLU + train-mode BatchNorm.  The kernel
    # additionally rounds the pre-BN activation to bf16, so allow a slightly looser
    # tolerance than pure f32.
    ref = jax.lax.conv_general_dilated(
        x.astype(jnp.bfloat16), weight.astype(jnp.bfloat16),
        window_strides=(2, 2), padding=((1, 1), (1, 1)),
        dimension_numbers=("NCHW", "OIHW", "NCHW"),
        preferred_element_type=jnp.float32)
    ref = jnp.where(ref > 0, ref, alpha * ref)
    mu = ref.mean(axis=(0, 2, 3), keepdims=True)
    var = ref.var(axis=(0, 2, 3), keepdims=True)
    ref = (ref - mu) * jax.lax.rsqrt(var + BN_EPS)
    ref = ref * gamma.reshape(1, -1, 1, 1) + beta.reshape(1, -1, 1, 1)

    assert out.shape == (N, Cout, H // 2, W // 2), out.shape
    err = float(jnp.max(jnp.abs(out - ref)))
    assert err < 3e-2, err
    print("KERNEL_OK")
</pallas_src>

<mosaic_0001>
module attributes {stable_mosaic.version = 11 : i64} {
  func.func @_conv_prelu_stats_kernel(%arg0: i32, %arg1: i32, %arg2: memref<1xf32, #tpu.memory_space<smem>>, %arg3: memref<64x48xbf16, #tpu.memory_space<vmem>>, %arg4: memref<48x128xbf16, #tpu.memory_space<vmem>>, %arg5: memref<64x128xbf16, #tpu.memory_space<vmem>>, %arg6: memref<1x2x128xf32, #tpu.memory_space<vmem>>) attributes {dimension_semantics = [#tpu.dimension_semantics<parallel>, #tpu.dimension_semantics<parallel>], iteration_bounds = array<i64: 2, 1>, scalar_prefetch = 0 : i64, scratch_operands = 0 : i64, tpu.core_type = #tpu.core_type<tc>, window_params = [{transform_indices = @transform_0, window_bounds = array<i64: 1>}, {transform_indices = @transform_1, window_bounds = array<i64: 64, 48>}, {transform_indices = @transform_2, window_bounds = array<i64: 48, 128>}, {transform_indices = @transform_3, window_bounds = array<i64: 64, 128>}, {transform_indices = @transform_4, window_bounds = array<i64: 1, 2, 128>}]} {
    %c0 = arith.constant 0 : index
    %c0_0 = arith.constant 0 : index
    %0 = vector.load %arg3[%c0, %c0_0] : memref<64x48xbf16, #tpu.memory_space<vmem>>, vector<64x48xbf16>
    %c0_1 = arith.constant 0 : index
    %c0_2 = arith.constant 0 : index
    %1 = vector.load %arg4[%c0_1, %c0_2] : memref<48x128xbf16, #tpu.memory_space<vmem>>, vector<48x128xbf16>
    %cst = arith.constant dense<0.000000e+00> : vector<64x128xf32>
    %2 = tpu.matmul %0, %1, %cst {dimension_numbers = #tpu.dot_dimension_numbers<[1], [0], [0], [1], [0, 0, 1, 1], [], []>} : vector<64x48xbf16>, vector<48x128xbf16>, vector<64x128xf32> -> vector<64x128xf32>
    %c0_3 = arith.constant 0 : index
    %3 = memref.load %arg2[%c0_3] : memref<1xf32, #tpu.memory_space<smem>>
    %cst_4 = arith.constant 0.000000e+00 : f32
    %4 = vector.broadcast %cst_4 : f32 to vector<64x128xf32>
    %5 = arith.cmpf ogt, %2, %4 : vector<64x128xf32>
    %6 = vector.broadcast %3 : f32 to vector<64x128xf32>
    %7 = arith.mulf %6, %2 : vector<64x128xf32>
    %8 = arith.select %5, %2, %7 : vector<64x128xi1>, vector<64x128xf32>
    %cst_5 = arith.constant dense<0.000000e+00> : vector<128xf32>
    %9 = vector.multi_reduction <add>, %8, %cst_5 [0] : vector<64x128xf32> to vector<128xf32>
    %10 = vector.shape_cast %9 : vector<128xf32> to vector<1x128xf32>
    %c0_6 = arith.constant 0 : index
    %c0_7 = arith.constant 0 : index
    %c0_8 = arith.constant 0 : index
    %11 = vector.load %arg6[%c0_6, %c0_7, %c0_8] : memref<1x2x128xf32, #tpu.memory_space<vmem>>, vector<1x1x128xf32>
    %12 = vector.shape_cast %11 : vector<1x1x128xf32> to vector<1x128xf32>
    %13 = vector.shape_cast %10 : vector<1x128xf32> to vector<1x1x128xf32>
    tpu.vector_store %arg6[%c0_6, %c0_7, %c0_8], %13 {strides = array<i32>} : memref<1x2x128xf32, #tpu.memory_space<vmem>>, vector<1x1x128xf32>,
    %14 = arith.mulf %8, %8 : vector<64x128xf32>
    %cst_9 = arith.constant dense<0.000000e+00> : vector<128xf32>
    %15 = vector.multi_reduction <add>, %14, %cst_9 [0] : vector<64x128xf32> to vector<128xf32>
    %16 = vector.shape_cast %15 : vector<128xf32> to vector<1x128xf32>
    %c0_10 = arith.constant 0 : index
    %c1 = arith.constant 1 : index
    %c0_11 = arith.constant 0 : index
    %17 = vector.load %arg6[%c0_10, %c1, %c0_11] : memref<1x2x128xf32, #tpu.memory_space<vmem>>, vector<1x1x128xf32>
    %18 = vector.shape_cast %17 : vector<1x1x128xf32> to vector<1x128xf32>
    %19 = vector.shape_cast %16 : vector<1x128xf32> to vector<1x1x128xf32>
    tpu.vector_store %arg6[%c0_10, %c1, %c0_11], %19 {strides = array<i32>} : memref<1x2x128xf32, #tpu.memory_space<vmem>>, vector<1x1x128xf32>,
    %20 = arith.truncf %8 : vector<64x128xf32> to vector<64x128xbf16>
    %c0_12 = arith.constant 0 : index
    %c0_13 = arith.constant 0 : index
    %21 = vector.load %arg5[%c0_12, %c0_13] : memref<64x128xbf16, #tpu.memory_space<vmem>>, vector<64x128xbf16>
    tpu.vector_store %arg5[%c0_12, %c0_13], %20 {strides = array<i32>} : memref<64x128xbf16, #tpu.memory_space<vmem>>, vector<64x128xbf16>,
    return
  }
  func.func @transform_0(%arg0: i32, %arg1: i32) -> i32 {
    %c0_i32 = arith.constant 0 : i32
    %c0_i32_0 = arith.constant 0 : i32
    return %c0_i32 : i32
  }
  func.func @transform_1(%arg0: i32, %arg1: i32) -> (i32, i32) {
    %c0_i32 = arith.constant 0 : i32
    %c0_i32_0 = arith.constant 0 : i32
    return %arg0, %c0_i32 : i32, i32
  }
  func.func @transform_2(%arg0: i32, %arg1: i32) -> (i32, i32) {
    %c0_i32 = arith.constant 0 : i32
    %c0_i32_0 = arith.constant 0 : i32
    return %c0_i32, %arg1 : i32, i32
  }
  func.func @transform_3(%arg0: i32, %arg1: i32) -> (i32, i32) {
    %c0_i32 = arith.constant 0 : i32
    return %arg0, %arg1 : i32, i32
  }
  func.func @transform_4(%arg0: i32, %arg1: i32) -> (i32, i32, i32) {
    %c0_i32 = arith.constant 0 : i32
    %c0_i32_0 = arith.constant 0 : i32
    return %arg0, %c0_i32, %arg1 : i32, i32, i32
  }
}

module attributes {stable_mosaic.version = 11 : i64} {
  func.func @_bn_apply_kernel(%arg0: i32, %arg1: i32, %arg2: memref<64x128xbf16, #tpu.memory_space<vmem>>, %arg3: memref<1x128xf32, #tpu.memory_space<vmem>>, %arg4: memref<1x128xf32, #tpu.memory_space<vmem>>, %arg5: memref<64x128xf32, #tpu.memory_space<vmem>>) attributes {dimension_semantics = [#tpu.dimension_semantics<parallel>, #tpu.dimension_semantics<parallel>], iteration_bounds = array<i64: 2, 1>, scalar_prefetch = 0 : i64, scratch_operands = 0 : i64, tpu.core_type = #tpu.core_type<tc>, window_params = [{transform_indices = @transform_0, window_bounds = array<i64: 64, 128>}, {transform_indices = @transform_1, window_bounds = array<i64: 1, 128>}, {transform_indices = @transform_2, window_bounds = array<i64: 1, 128>}, {transform_indices = @transform_3, window_bounds = array<i64: 64, 128>}]} {
    %c0 = arith.constant 0 : index
    %c0_0 = arith.constant 0 : index
    %0 = vector.load %arg2[%c0, %c0_0] : memref<64x128xbf16, #tpu.memory_space<vmem>>, vector<64x128xbf16>
    %1 = arith.extf %0 : vector<64x128xbf16> to vector<64x128xf32>
    %c0_1 = arith.constant 0 : index
    %c0_2 = arith.constant 0 : index
    %2 = vector.load %arg3[%c0_1, %c0_2] : memref<1x128xf32, #tpu.memory_space<vmem>>, vector<1x128xf32>
    %3 = vector.broadcast %2 : vector<1x128xf32> to vector<64x128xf32>
    %4 = arith.mulf %1, %3 : vector<64x128xf32>
    %c0_3 = arith.constant 0 : index
    %c0_4 = arith.constant 0 : index
    %5 = vector.load %arg4[%c0_3, %c0_4] : memref<1x128xf32, #tpu.memory_space<vmem>>, vector<1x128xf32>
    %6 = vector.broadcast %5 : vector<1x128xf32> to vector<64x128xf32>
    %7 = arith.addf %4, %6 : vector<64x128xf32>
    %c0_5 = arith.constant 0 : index
    %c0_6 = arith.constant 0 : index
    %8 = vector.load %arg5[%c0_5, %c0_6] : memref<64x128xf32, #tpu.memory_space<vmem>>, vector<64x128xf32>
    tpu.vector_store %arg5[%c0_5, %c0_6], %7 {strides = array<i32>} : memref<64x128xf32, #tpu.memory_space<vmem>>, vector<64x128xf32>,
    return
  }
  func.func @transform_0(%arg0: i32, %arg1: i32) -> (i32, i32) {
    %c0_i32 = arith.constant 0 : i32
    return %arg0, %arg1 : i32, i32
  }
  func.func @transform_1(%arg0: i32, %arg1: i32) -> (i32, i32) {
    %c0_i32 = arith.constant 0 : i32
    %c0_i32_0 = arith.constant 0 : i32
    return %c0_i32, %arg1 : i32, i32
  }
  func.func @transform_2(%arg0: i32, %arg1: i32) -> (i32, i32) {
    %c0_i32 = arith.constant 0 : i32
    %c0_i32_0 = arith.constant 0 : i32
    return %c0_i32, %arg1 : i32, i32
  }
  func.func @transform_3(%arg0: i32, %arg1: i32) -> (i32, i32) {
    %c0_i32 = arith.constant 0 : i32
    return %arg0, %arg1 : i32, i32
  }
}

</mosaic_0001>

<bundles_post_ra>
// kernel: conv_block_forward_nhwc.3
= control target key start
LH: loop header
LB: loop body
LE: loop exit
PB: predicated region body
PF: predicated region fallthrough
CT: control target
= control target key end

     0   :  { %8 = vsyncpa [#allocation3], 0  ;;  %s725_s0 = inlined_call_operand.vmem [shape: bf16[128,128], index: 0, kind: input, shape index: {}]   ;;  %s726_s1 = inlined_call_operand.vmem [shape: f32[1,128], index: 1, kind: input, shape index: {}]   ;;  %s727_s2 = inlined_call_operand.vmem [shape: f32[1,128], index: 2, kind: input, shape index: {}]   ;;  %s728_s3 = inlined_call_operand.hbm [shape: f32[128,128], index: 3, kind: output, shape index: {}]  }
   0x1   :  { %10 = vsyncpa [#allocation3 + $0x1], 0  ;;  %s590_s12 = smov 0   ;;  %s592_s13 = smov 0  }
   0x2   :  { %s594_s14 = smov 0   ;;  %s596_s15 = smov 0  }
   0x3   :  { %s598_s16 = smov 0   ;;  %s600_s17 = smov 0  }
   0x4 LB: > { %s393_s18 = sadd.s32 4294967295, %s565_s17   ;;  %s394_s19 = sadd.s32 4294967294, %s565_s17   ;;  %s565_s17 = sphi %s600_s17, %s16_s17   ;;  %s561_s16 = sphi %s598_s16, %s735_s16   ;;  %s557_s15 = sphi %s596_s15, %s734_s15   ;;  %s553_s14 = sphi %s594_s14, %s733_s14   ;;  %s549_s13 = sphi %s592_s13, %s732_s13   ;;  %s545_s12 = sphi %s590_s12, %s731_s12  }
   0x5   : > { %s28_s20 = sadd.s32 1, %s561_s16  ;;  %s117_s21 = sadd.s32 1, %s553_s14 }
   0x6   : > { %p30_p0 = scmp.ge.s32.totalorder %s28_s20, 2  ;;  %p127_p1 = scmp.ne.s32.totalorder %s553_s14, %s549_s13 }
   0x7   : > { %p128_p2 = scmp.eq.s32.totalorder %s393_s18, 1  ;;  %p133_p3 = scmp.ne.s32.totalorder %s549_s13, %s545_s12 }
   0x8   : > { %s737_s20 = smov (%p30_p0, %s28_s20), 0  ;;  %p134_p5 = scmp.eq.s32.totalorder %s394_s19, 1 }
   0x9   : > { %p630_p4 = por %p128_p2, %p127_p1  ;;  %s112_s23 = ssub.s32 %s561_s16, %s737_s20 }
   0xa   : > { %p399_p6 = scmp.ge.s32.totalorder %s565_s17, 1  ;;  %p115_p7 = scmp.eq.s32.totalorder %s112_s23, 0 }
   0xb   : > { %p637_p8 = por %p134_p5, %p133_p3  ;;  %p176_p9 = scmp.lt.s32.totalorder %s565_s17, 3 }
   0xc   : > { %s643_s25 = scalar_select %p115_p7, %s553_s14, %s117_s21  }
   0xd   : > { %p177_p10 = pnand %p399_p6, %p176_p9 }
   0xe   : > { %s206_s26 = sand.u32 (!%p177_p10), 1, %s549_s13   ;;  %s401_s27 = sshll.u32 (!%p177_p10), %s557_s15, 3  ;;  %v403_v0 = vld [vmem:[%s726_s1] ss:$0 sm:$0xff] (!%p177_p10) }
   0xf   : > { %180 = sbr.rel (%p177_p10) target bundleno = 50 (0x32), region = 32  ;;  %p210_p11 = scmp.lt.s32.totalorder (!%p177_p10), %s401_s27, 15  ;;  %v404_v9 = vld [vmem:[%s727_s2] ss:$0 sm:$0xff] (!%p177_p10) }
  0x10   : > { %s400_s28 = sshll.u32 (!%p177_p10), %s206_s26, 6  ;;  %s410_s18 = sshll.u32 (!%p177_p10), %s557_s15, 10 }
  0x11   : > { %s658_s10 = scalar_lea.vmem (!%p177_p10), [#allocation2], %s400_s28  ;;  %s667_s21 = scalar_lea.hbm (!%p177_p10), %s728_s3, %s410_s18 }
  0x12   : > { %s294_s11 = sshll.u32 (!%p177_p10), %s658_s10, 4  ;;  %s679_s23 = scalar_lea.sflag (!%p177_p10), [#allocation3], %s206_s26  ;;  %s662_s11 = int_to_ptr.vmem [resolvable:$true] %s294_s11 }
  0x13   : > { %s567_s28 = smov (!%p177_p10), [#allocation2]  }
  0x16   : > { %s739_s27 = smov (!%p210_p11, %s401_s27), 15 }
  0x17   : > { %s402_s29 = sshll.u32 %s739_s27, 2  ;;  %s487_s27 = scalar_lea.vmem %s662_s11, 1024 }
  0x18   : > { %s216_s5 = scalar_lea.vmem %s725_s0, %s402_s29  ;;  %p488_p12 = scmp.ne.s32.totalorder %s662_s11, %s487_s27 }
  0x19   : > { %v412_v1 = vld [vmem:[%s216_s5] sm:$0xff]   ;;  %v427_v2 = vld [vmem:[%s216_s5 + $0x8] sm:$0xff]   ;;  %v428_v3 = vld [vmem:[%s216_s5 + $0x10] sm:$0xff]   ;;  %s491_s29 = sshll.u32 %s567_s28, 4  ;;  %s492_s29 = int_to_ptr.vmem [resolvable:$false] %s491_s29 }
  0x1a   : > { %v413_v4 = vunpack.c.l.bf16 %v412_v1  ;;  %v414_v5 = vunpack.c.h.bf16 %v412_v1  ;;  %v417_v6 = vunpack.c.l.bf16 %v427_v2  ;;  %v418_v7 = vunpack.c.h.bf16 %v427_v2  ;;  %v429_v8 = vld [vmem:[%s216_s5 + $0x18] sm:$0xff]   ;;  %p489_p13 = pnand %p488_p12, %p630_p4  ;;  %s493_s30 = scalar_lea.vmem %s492_s29, 2048 }
  0x1b   : > { %v421_v10 = vunpack.c.l.bf16 %v428_v3  ;;  %v422_v11 = vunpack.c.h.bf16 %v428_v3  ;;  %v425_v12 = vunpack.c.l.bf16 %v429_v8  ;;  %v426_v13 = vunpack.c.h.bf16 %v429_v8  ;;  %p494_p1 = scmp.lt.s32.totalorder %s662_s11, %s492_s29  ;;  %p495_p2 = scmp.lt.s32.totalorder %s493_s30, %s487_s27 }
  0x1c   : > { %v248_v14 = vmul.f32 %v413_v4, %v403_v0  ;;  %v249_v15 = vmul.f32 %v414_v5, %v403_v0  ;;  %v250_v16 = vmul.f32 %v417_v6, %v403_v0  ;;  %v251_v17 = vmul.f32 %v418_v7, %v403_v0  ;;  %p490_p0 = pneg %p489_p13 }
  0x1d   : > { %v252_v18 = vmul.f32 %v421_v10, %v403_v0  ;;  %v253_v19 = vmul.f32 %v422_v11, %v403_v0  ;;  %v254_v20 = vmul.f32 %v425_v12, %v403_v0  ;;  %v255_v21 = vmul.f32 %v426_v13, %v403_v0  ;;  %p496_p3 = por %p495_p2, %p494_p1 }
  0x1e   : > { %v263_v22 = vadd.f32 %v404_v9, %v248_v14  ;;  %v264_v23 = vadd.f32 %v404_v9, %v249_v15  ;;  %v265_v24 = vadd.f32 %v404_v9, %v250_v16  ;;  %v266_v25 = vadd.f32 %v404_v9, %v251_v17 }
  0x1f   : > { %v267_v26 = vadd.f32 %v404_v9, %v252_v18  ;;  %v268_v27 = vadd.f32 %v404_v9, %v253_v19  ;;  %v269_v28 = vadd.f32 %v404_v9, %v254_v20  ;;  %v270_v29 = vadd.f32 %v404_v9, %v255_v21  ;;  %p497_p5 = pnand %p496_p3, %p490_p0 }
  0x20   : > { %271 = vst [vmem:[%s658_s10] sm:$0xff] %v263_v22  ;;  %272 = vst [vmem:[%s658_s10 + $0x8] sm:$0xff] %v264_v23 }
  0x21   : > { %273 = vst [vmem:[%s658_s10 + $0x10] sm:$0xff] %v265_v24  ;;  %274 = vst [vmem:[%s658_s10 + $0x18] sm:$0xff] %v266_v25 }
  0x22   : > { %275 = vst [vmem:[%s658_s10 + $0x20] sm:$0xff] %v267_v26  ;;  %276 = vst [vmem:[%s658_s10 + $0x28] sm:$0xff] %v268_v27 }
  0x23   : > { %277 = vst [vmem:[%s658_s10 + $0x30] sm:$0xff] %v269_v28  ;;  %278 = vst [vmem:[%s658_s10 + $0x38] sm:$0xff] %v270_v29 }
  0x24   : > { %500 = shalt.err (!%p497_p5)
}
  0x25   : > { %s501_s26 = scalar_lea.hbm %s667_s21, 1024  ;;  %s505_s6 = scalar_lea.hbm %s728_s3, 2048 }
  0x26   : > { %p502_p6 = scmp.ne.s32.totalorder %s667_s21, %s501_s26  ;;  %p506_p10 = scmp.lt.u32.totalorder %s667_s21, %s728_s3 }
  0x27   : > { %p507_p11 = scmp.lt.u32.totalorder %s505_s6, %s501_s26  ;;  %p509_p13 = scmp.lt.u32.totalorder %s501_s26, %s667_s21 }
  0x28   : > { %p503_p7 = pnand %p502_p6, %p630_p4 }
  0x29   : > { %p508_p12 = por %p507_p11, %p506_p10 }
  0x2a   : > { %p504_p9 = pneg %p503_p7 }
  0x2b   : > { %p510_p0 = por %p509_p13, %p508_p12 }
  0x2d   : > { %p511_p1 = pnand %p510_p0, %p504_p9 }
  0x2f   : > { %514 = shalt.err (!%p511_p1)
}
  0x30   : > { %s568_s9 = smov 128   ;;  %s569_s10 = smov 8  }
  0x31   : > { %430 = dma.vmem_to_hbm [thread:$0]  (%p630_p4), %s662_s11, 1024, %s667_s21, %s679_s23, %s568_s9, %s568_s9, %s569_s10  }
  0x32 PF: > { %p436_p2 = scmp.ge.s32.totalorder %s565_s17, 2  ;;  %s309_s18 = sand.u32 1, %s545_s12  }
  0x33   : > { %s310_s15 = scalar_lea.sflag [#allocation3], %s309_s18 }
  0x34   : > { %p433_p3 = pnand %p436_p2, %p637_p8 }
  0x36   : > { %540 = dma.done.wait (!%p433_p3), %s310_s15, 1024  }
  0x37   : > { %542 = vsyncadd (!%p433_p3), %s310_s15, 4294966272  ;;  %s16_s17 = sadd.s32 1, %s565_s17   ;;  %s731_s12 = smov %s549_s13 }
  0x38   : > { %p13_p5 = scmp.ge.s32.totalorder %s16_s17, 4   ;;  %s732_s13 = smov %s553_s14 }
  0x39   : > { %s733_s14 = smov %s643_s25  ;;  %s734_s15 = smov %s561_s16 }
  0x3a   : > { %s735_s16 = smov %s737_s20  ;;  %15 = sbr.rel (!%p13_p5) target bundleno = 4 (0x4), region = 73 }
  0x41   :  { %315 = vsyncpa [#allocation3], 1 }
  0x42   :  { %317 = vsyncpa [#allocation3 + $0x1], 1 }

// kernel: conv_block_forward_nhwc.2
= control target key start
LH: loop header
LB: loop body
LE: loop exit
PB: predicated region body
PF: predicated region fallthrough
CT: control target
= control target key end

     0   :  { %s795_s17 = smov 0   ;;  %s797_s18 = smov 0   ;;  %s858_s0 = inlined_call_operand.<no memory space> [shape: f32[1], index: 0, kind: input, shape index: {}]   ;;  %s859_s1 = inlined_call_operand.vmem [shape: bf16[128,48], index: 1, kind: input, shape index: {}]   ;;  %s860_s2 = inlined_call_operand.vmem [shape: bf16[48,128], index: 2, kind: input, shape index: {}]   ;;  %s861_s3 = inlined_call_operand.vmem [shape: bf16[128,128], index: 3, kind: output, shape index: {0}]   ;;  %s862_s4 = inlined_call_operand.vmem [shape: f32[2,2,128], index: 4, kind: output, shape index: {1}]  }
   0x1   :  { %10 = sst [smem:[#allocation2]] %s858_s0  ;;  %s799_s19 = smov 0  }
   0x2 LB: > { %s28_s0 = sadd.s32 1, %s761_s18  ;;  %p627_p0 = scmp.ge.s32.totalorder %s765_s19, 1  ;;  %s765_s19 = sphi %s799_s19, %s16_s19   ;;  %s761_s18 = sphi %s797_s18, %s864_s18   ;;  %s757_s17 = sphi %s795_s17, %s863_s17  }
   0x3   : > { %p30_p1 = scmp.ge.s32.totalorder %s28_s0, 2  ;;  %p192_p2 = scmp.lt.s32.totalorder %s765_s19, 3 }
   0x5   : > { %s866_s0 = smov (%p30_p1, %s28_s0), 0  ;;  %p193_p3 = pnand %p627_p0, %p192_p2 }
   0x6   : > { %v736_v0 = vld [vmem:[%s860_s2] sm:$0xff] (!%p193_p3)   ;;  %s628_s22 = sshll.u32 (!%p193_p3), %s757_s17, 3  ;;  %v737_v1 = vld [vmem:[%s860_s2 + $0x8] sm:$0xff] (!%p193_p3)   ;;  %v738_v2 = vld [vmem:[%s860_s2 + $0x10] sm:$0xff] (!%p193_p3)   ;;  %vm311_vm0 = vcmask (!%p193_p3), 392192   ;;  %s389_s5 = sld [smem:[#allocation2]] (!%p193_p3) }
   0x7   : > { %196 = sbr.rel (%p193_p3) target bundleno = 266 (0x10a), region = 32  ;;  %p233_p4 = scmp.lt.s32.totalorder (!%p193_p3), %s628_s22, 15  ;;  %692 = vmatprep.subr.bf16.mxu0 (!%p193_p3), %v736_v0  ;;  %706 = vmatprep.subr.bf16.mxu1 (!%p193_p3), %v736_v0 }
   0x8   : > { %693 = vmatpush3.bf16.msra.mxu0 (!%p193_p3), %v736_v0  ;;  %709 = vmatpush3.bf16.msra.mxu1 (!%p193_p3), %v736_v0  ;;  %p251_p5 = scmp.lt.s32.totalorder (!%p193_p3), %s757_s17, 1 }
   0x9   : > { %694 = vmatprep.subr.bf16.mxu0 (!%p193_p3), %v737_v1  ;;  %707 = vmatprep.subr.bf16.mxu1 (!%p193_p3), %v737_v1 }
   0xc   : > { %695 = vmatpush3.bf16.msra.mxu0 (!%p193_p3), %v737_v1  ;;  %710 = vmatpush3.bf16.msra.mxu1 (!%p193_p3), %v737_v1  ;;  %v398_v7 = vstv (!%p193_p3), %s389_s5 }
   0xd   : > { %696 = vmatprep.subr.bf16.mxu0 (!%p193_p3), %v738_v2  ;;  %708 = vmatprep.subr.bf16.mxu1 (!%p193_p3), %v738_v2 }
   0xe   : > { %s868_s22 = smov (!%p233_p4, %s628_s22), 15  ;;  %s870_s17 = smov (!%p251_p5, %s757_s17), 1 }
   0xf   : > { %s629_s27 = sshll.u32 %s868_s22, 2  ;;  %s632_s9 = sshll.u32 %s870_s17, 1 }
  0x10   : > { %s236_s30 = scalar_lea.vmem %s859_s1, %s629_s27  ;;  %697 = vmatpush3.bf16.msra.mxu0 %v738_v2  ;;  %711 = vmatpush3.bf16.msra.mxu1 %v738_v2  ;;  %s838_s8 = scalar_lea.vmem %s861_s3, %s629_s27 }
  0x11   : > { %v739_v3 = vld [vmem:[%s236_s30] sm:$0xff]   ;;  %v740_v4 = vld [vmem:[%s236_s30 + $0x8] sm:$0xff]   ;;  %v741_v5 = vld [vmem:[%s236_s30 + $0x10] sm:$0xff]   ;;  %s257_s12 = scalar_lea.vmem %s862_s4, %s632_s9 }
  0x12   : > { %698 = vmatprep.mubr.msk.bf16.mxu0 %vm311_vm0, %v739_v3  ;;  %v742_v6 = vld [vmem:[%s236_s30 + $0x18] sm:$0xff]   ;;  %702 = vmatprep.mubr.msk.bf16.mxu1 %vm311_vm0, %v741_v5 }
  0x13   : > { %699 = vmatmul.mubr.msk.bf16.vlgmr.msra.gmra.mrb[0].mxu0 %vm311_vm0, %v740_v4  ;;  %703 = vmatmul.mubr.msk.bf16.vlgmr.msra.gmra.mrb[0].mxu1 %vm311_vm0, %v742_v6 }
  0xe6   : > { %v700_v8 = vpop.f32.mrb[0].mxu0  ;;  %v704_v9 = vpop.f32.mrb[0].mxu1 }
  0xe7   : > { %v401_v10 = vmul.f32 %v700_v8, %v398_v7  ;;  %v358_v11 = vpop.f32.mrb[1].mxu0  ;;  %v374_v12 = vpop.f32.mrb[1].mxu1  ;;  %vm392_vm1 = vcmp.gt.f32.partialorder %v700_v8, 0.0  ;;  %v405_v21 = vmul.f32 %v704_v9, %v398_v7  ;;  %vm396_vm5 = vcmp.gt.f32.partialorder %v704_v9, 0.0 }
  0xe8   : > { %vm390_vm2 = vcmp.gt.f32.partialorder %v358_v11, 0.0  ;;  %v399_v13 = vmul.f32 %v398_v7, %v358_v11  ;;  %v701_v14 = vpop.f32.mrb[2].mxu0  ;;  %v705_v15 = vpop.f32.mrb[2].mxu1  ;;  %v403_v24 = vmul.f32 %v398_v7, %v374_v12  ;;  %vm394_vm6 = vcmp.gt.f32.partialorder %v374_v12, 0.0 }
  0xe9   : > { %vm393_vm3 = vcmp.gt.f32.partialorder %v701_v14, 0.0  ;;  %v402_v16 = vmul.f32 %v701_v14, %v398_v7  ;;  %v361_v17 = vpop.f32.mrb[3].mxu0  ;;  %v377_v18 = vpop.f32.mrb[3].mxu1  ;;  %v409_v22 = vsel %vm392_vm1, %v700_v8, %v401_v10  ;;  %vm397_vm7 = vcmp.gt.f32.partialorder %v705_v15, 0.0 }
  0xea   : > { %v407_v19 = vsel %vm390_vm2, %v358_v11, %v399_v13  ;;  %vm391_vm4 = vcmp.gt.f32.partialorder %v361_v17, 0.0  ;;  %v400_v20 = vmul.f32 %v398_v7, %v361_v17  ;;  %v413_v31 = vsel %vm396_vm5, %v704_v9, %v405_v21 }
  0xeb   : > { %v410_v23 = vsel %vm393_vm3, %v701_v14, %v402_v16  ;;  %v429_v25 = vmul.f32 %v407_v19, %v407_v19  ;;  %v406_v32 = vmul.f32 %v705_v15, %v398_v7  ;;  %vm395_vm8 = vcmp.gt.f32.partialorder %v377_v18, 0.0 }
  0xec   : > { %v670_v26 = vpack.c.bf16 %v410_v23, %v409_v22  ;;  %v408_v27 = vsel %vm391_vm4, %v361_v17, %v400_v20  ;;  %v404_v33 = vmul.f32 %v398_v7, %v377_v18  ;;  %v431_v34 = vmul.f32 %v409_v22, %v409_v22 }
  0xed   : > { %v415_v28 = vadd.f32 %v408_v27, %v407_v19  ;;  %v430_v29 = vmul.f32 %v408_v27, %v408_v27  ;;  %v665_v30 = vpack.c.bf16 %v408_v27, %v407_v19  ;;  %v411_v37 = vsel %vm394_vm6, %v374_v12, %v403_v24 }
  0xee   : > { %682 = vst [vmem:[%s838_s8 + $0x8] sm:$0xff] %v670_v26   ;;  %v414_v38 = vsel %vm397_vm7, %v705_v15, %v406_v32  ;;  %v412_v39 = vsel %vm395_vm8, %v377_v18, %v404_v33  ;;  %v432_v40 = vmul.f32 %v410_v23, %v410_v23  ;;  %v433_v46 = vmul.f32 %v411_v37, %v411_v37 }
  0xef   : > { %v416_v35 = vadd.f32 %v415_v28, %v409_v22  ;;  %v437_v36 = vadd.f32 %v430_v29, %v429_v25  ;;  %666 = vst [vmem:[%s838_s8] sm:$0xff] %v665_v30   ;;  %v680_v43 = vpack.c.bf16 %v414_v38, %v413_v31  ;;  %v675_v44 = vpack.c.bf16 %v412_v39, %v411_v37 }
  0xf0   : > { %v434_v50 = vmul.f32 %v412_v39, %v412_v39  ;;  %v435_v51 = vmul.f32 %v413_v31, %v413_v31  ;;  %v436_v54 = vmul.f32 %v414_v38, %v414_v38 }
  0xf1   : > { %v438_v41 = vadd.f32 %v437_v36, %v431_v34  ;;  %v417_v42 = vadd.f32 %v416_v35, %v410_v23  ;;  %684 = vst [vmem:[%s838_s8 + $0x18] sm:$0xff] %v680_v43   ;;  %683 = vst [vmem:[%s838_s8 + $0x10] sm:$0xff] %v675_v44  }
  0xf3   : > { %v418_v45 = vadd.f32 %v417_v42, %v411_v37  ;;  %v439_v47 = vadd.f32 %v438_v41, %v432_v40 }
  0xf5   : > { %v440_v48 = vadd.f32 %v439_v47, %v433_v46  ;;  %v419_v49 = vadd.f32 %v418_v45, %v412_v39 }
  0xf7   : > { %v420_v52 = vadd.f32 %v419_v49, %v413_v31  ;;  %v441_v53 = vadd.f32 %v440_v48, %v434_v50 }
  0xf9   : > { %v421_v55 = vadd.f32 %v420_v52, %v414_v38  ;;  %v442_v56 = vadd.f32 %v441_v53, %v435_v51 }
  0xfb   : > { %v422_v57 = vrot.slane %v421_v55, 4  ;;  %v443_v58 = vadd.f32 %v442_v56, %v436_v54 }
  0xfd   : > { %v423_v59 = vadd.f32 %v422_v57, %v421_v55  ;;  %v444_v60 = vrot.slane %v443_v58, 4 }
  0xff   : > { %v424_v61 = vrot.slane %v423_v59, 2  ;;  %v445_v62 = vadd.f32 %v444_v60, %v443_v58 }
 0x101   : > { %v425_v63 = vadd.f32 %v424_v61, %v423_v59  ;;  %v446_v0 = vrot.slane %v445_v62, 2 }
 0x103   : > { %v426_v1 = vrot.slane %v425_v63, 1  ;;  %v447_v2 = vadd.f32 %v446_v0, %v445_v62 }
 0x105   : > { %v427_v3 = vadd.f32 %v426_v1, %v425_v63  ;;  %v448_v4 = vrot.slane %v447_v2, 1 }
 0x107   : > { %428 = vst [vmem:[%s257_s12] sm:$0x1] %v427_v3  ;;  %v449_v5 = vadd.f32 %v448_v4, %v447_v2 }
 0x109   : > { %450 = vst [vmem:[%s257_s12 + $0x1] sm:$0x1] %v449_v5 }
 0x10a PF: > { %s16_s19 = sadd.s32 1, %s765_s19   ;;  %s863_s17 = smov %s761_s18 }
 0x10b   : > { %p13_p6 = scmp.ge.s32.totalorder %s16_s19, 4   ;;  %s864_s18 = smov %s866_s0 }
 0x10d   :  { %15 = sbr.rel (!%p13_p6) target bundleno = 2 (0x2), region = 77 }

</bundles_post_ra>
